<compile_context>
chip_gen: v7x
topology: tpu7x:2x2x1
jax: 0.10.0
libtpu: 0.0.40
codegen_flags: <defaults>
</compile_context>

<pallas_src>
import functools

import jax
import jax.numpy as jnp
import numpy as np
from jax import lax
from jax.experimental import pallas as pl
from jax.experimental.pallas import tpu as pltpu


# ---------------------------------------------------------------------------
# Host-side (trace-time) construction of the 1-D interpolation matrices.
# ---------------------------------------------------------------------------
@functools.lru_cache(maxsize=None)
def _interp_matrix_np(out_size: int, in_size: int) -> np.ndarray:
    """(out_size, in_size) row-stochastic matrix for 1-D linear interpolation
    with PyTorch align_corners=False semantics (half-pixel centers)."""
    scale = in_size / out_size
    dst = np.arange(out_size, dtype=np.float64)
    src = (dst + 0.5) * scale - 0.5
    src = np.clip(src, 0.0, float(in_size - 1))
    lo = np.floor(src).astype(np.int64)
    hi = np.minimum(lo + 1, in_size - 1)
    w_hi = (src - lo).astype(np.float32)
    w_lo = np.float32(1.0) - w_hi
    m = np.zeros((out_size, in_size), np.float32)
    rows = np.arange(out_size)
    np.add.at(m, (rows, lo), w_lo)
    np.add.at(m, (rows, hi), w_hi)
    return m


# ---------------------------------------------------------------------------
# Small sizing helpers (generation-aware VMEM budget, planes-per-step).
# ---------------------------------------------------------------------------
def _cdiv(a, b):
    return -(-a // b)


def _round_up(v, m):
    return _cdiv(v, m) * m


def _tile_bytes(rows, cols, itemsize):
    """Bytes of a (rows, cols) VMEM tile including (8, 128) layout padding."""
    return _round_up(max(rows, 1), 8) * _round_up(max(cols, 1), 128) * itemsize


def _vmem_budget():
    """(per-step budget, vmem_limit_bytes), generation-aware."""
    cap = None
    try:
        cap = getattr(pltpu.get_tpu_info(), "vmem_capacity_bytes", None)
    except Exception:
        cap = None
    if not cap:
        cap = 64 * 1024 * 1024  # conservative (v7x-sized) fallback
    if cap >= 96 * 1024 * 1024:  # v5e / v6e: 128 MiB physical VMEM
        return 48 * 1024 * 1024, 96 * 1024 * 1024
    return 20 * 1024 * 1024, 32 * 1024 * 1024  # v7x: 64 MiB physical


def _choose_planes_per_step(b, budget, step_bytes, max_tb=32):
    """Pick TB = planes per grid step.

    Preference: fit the VMEM budget, then a grid of >= 2 (ideally even) steps
    so both v7x TensorCores get balanced work, then minimal padding, then the
    largest TB (bigger DMAs, fewer ~0.35us grid steps). `max_tb` bounds the
    in-kernel per-plane loop length (IR / compile-time)."""
    cap = max(1, min(b, max_tb))
    while cap > 1 and step_bytes(cap) > budget:
        cap -= 1
    best, best_key = 1, None
    for tb in range(1, cap + 1):
        g = _cdiv(b, tb)
        pad = g * tb - b
        key = (g >= 2, (g % 2 == 0) or g == 1, -pad, tb)
        if best_key is None or key > best_key:
            best, best_key = tb, key
    return best


# ---------------------------------------------------------------------------
# Kernels.
# ---------------------------------------------------------------------------
def _split_bf16(v):
    """Exact-ish split v ~= hi + lo with hi, lo in bf16 (~16 mantissa bits)."""
    hi = v.astype(jnp.bfloat16)
    lo = (v - hi.astype(jnp.float32)).astype(jnp.bfloat16)
    return hi, lo


def _dot3(a_hi, a_lo, b_hi, b_lo):
    """bf16_3x product of (a_hi + a_lo) @ (b_hi + b_lo) with f32 accumulation.

    Three 1-pass bf16 MXU matmuls (the lo@lo term is below f32 roundoff).
    Equivalent to lax.Precision.HIGH but uses only DEFAULT-precision bf16 dots,
    which Mosaic is guaranteed to lower."""
    f32 = jnp.float32
    return (jnp.dot(a_hi, b_hi, preferred_element_type=f32)
            + jnp.dot(a_hi, b_lo, preferred_element_type=f32)
            + jnp.dot(a_lo, b_hi, preferred_element_type=f32))


def _interp_kernel_3x(wh_hi_ref, wh_lo_ref, wwt_hi_ref, wwt_lo_ref, x_ref, o_ref):
    """f32 path (default): per-plane row matmul then column matmul, bf16_3x."""
    tb = x_ref.shape[0]
    wh_hi, wh_lo = wh_hi_ref[...], wh_lo_ref[...]
    wwt_hi, wwt_lo = wwt_hi_ref[...], wwt_lo_ref[...]

    def plane(s, carry):
        xs = x_ref[s].astype(jnp.float32)            # (H_in, W_in)
        xs_hi, xs_lo = _split_bf16(xs)
        tmp = _dot3(wh_hi, wh_lo, xs_hi, xs_lo)      # (H_out, W_in) f32, row pass
        t_hi, t_lo = _split_bf16(tmp)
        out = _dot3(t_hi, t_lo, wwt_hi, wwt_lo)      # (H_out, W_out) f32, col pass
        o_ref[s] = out.astype(o_ref.dtype)
        return carry

    lax.fori_loop(0, tb, plane, 0, unroll=tb <= 8)


def _interp_kernel_2w(wh_ref, wwt_ref, x_ref, o_ref, *, precision):
    """bf16 native path (precision=None) or exact f32 path (HIGHEST, opt-in)."""
    tb = x_ref.shape[0]
    wh, wwt = wh_ref[...], wwt_ref[...]

    def plane(s, carry):
        xs = x_ref[s]
        if xs.dtype != wh.dtype:                     # trace-time branch
            xs = xs.astype(wh.dtype)
        tmp = jnp.dot(wh, xs, preferred_element_type=jnp.float32,
                      precision=precision)
        tmp = tmp.astype(wwt.dtype)
        out = jnp.dot(tmp, wwt, preferred_element_type=jnp.float32,
                      precision=precision)
        o_ref[s] = out.astype(o_ref.dtype)
        return carry

    lax.fori_loop(0, tb, plane, 0, unroll=tb <= 8)


# ---------------------------------------------------------------------------
# Wrapper.
# ---------------------------------------------------------------------------
def interpolate_bilinear(x, size, *, exact=False):
    """Pallas equivalent of F.interpolate(x, size=size, mode='bilinear',
    align_corners=False). x is NCHW. `exact=True` opts into full-f32 MXU
    (Precision.HIGHEST, ~2x MXU work vs the default bf16_3x path)."""
    n, c, h_in, w_in = x.shape
    h_out, w_out = size
    b = n * c
    out_dtype = x.dtype

    if x.dtype == jnp.bfloat16:
        mode = "bf16"
    elif exact:
        mode = "exact"
    else:
        mode = "3x"

    wh_np = _interp_matrix_np(h_out, h_in)                       # (H_out, H_in)
    wwt_np = np.ascontiguousarray(_interp_matrix_np(w_out, w_in).T)  # (W_in, W_out)

    if mode == "3x":
        wh = jnp.asarray(wh_np)
        wwt = jnp.asarray(wwt_np)
        wh_hi = wh.astype(jnp.bfloat16)
        wh_lo = (wh - wh_hi.astype(jnp.float32)).astype(jnp.bfloat16)
        wwt_hi = wwt.astype(jnp.bfloat16)
        wwt_lo = (wwt - wwt_hi.astype(jnp.float32)).astype(jnp.bfloat16)
        weights = (wh_hi, wh_lo, wwt_hi, wwt_lo)
        weight_specs = [
            pl.BlockSpec((h_out, h_in), lambda i: (0, 0)),
            pl.BlockSpec((h_out, h_in), lambda i: (0, 0)),
            pl.BlockSpec((w_in, w_out), lambda i: (0, 0)),
            pl.BlockSpec((w_in, w_out), lambda i: (0, 0)),
        ]
        kernel = _interp_kernel_3x
        w_itemsize, n_weight_pairs = 2, 2
    else:
        wdt = jnp.bfloat16 if mode == "bf16" else jnp.float32
        weights = (jnp.asarray(wh_np, dtype=wdt), jnp.asarray(wwt_np, dtype=wdt))
        weight_specs = [
            pl.BlockSpec((h_out, h_in), lambda i: (0, 0)),
            pl.BlockSpec((w_in, w_out), lambda i: (0, 0)),
        ]
        precision = lax.Precision.HIGHEST if mode == "exact" else None
        kernel = functools.partial(_interp_kernel_2w, precision=precision)
        w_itemsize, n_weight_pairs = jnp.dtype(wdt).itemsize, 1

    x_itemsize = jnp.dtype(x.dtype).itemsize
    o_itemsize = jnp.dtype(out_dtype).itemsize
    # Count both default pipeline buffers for the (tiny, resident) weights.
    weight_bytes = 2 * n_weight_pairs * (
        _tile_bytes(h_out, h_in, w_itemsize) + _tile_bytes(w_in, w_out, w_itemsize))

    budget, vmem_limit = _vmem_budget()

    def step_bytes(tb):
        return (2 * tb * _tile_bytes(h_in, w_in, x_itemsize)        # in block (x2 buf)
                + 2 * tb * _tile_bytes(h_out, w_out, o_itemsize)    # out block (x2 buf)
                + 4 * _tile_bytes(h_out, max(w_in, w_out), 4)       # loop-local f32 temps
                + weight_bytes)

    tb = _choose_planes_per_step(b, budget, step_bytes)
    g = _cdiv(b, tb)
    b_pad = g * tb

    # Pure reshape (no transpose, no extra HBM traffic); pad planes only if
    # N*C has no good divisor (padded planes compute zeros and are sliced off).
    x_flat = x.reshape(b, h_in, w_in)
    if b_pad != b:
        x_flat = jnp.pad(x_flat, ((0, b_pad - b), (0, 0), (0, 0)))

    out_flat = pl.pallas_call(
        kernel,
        out_shape=jax.ShapeDtypeStruct((b_pad, h_out, w_out), out_dtype),
        grid_spec=pltpu.PrefetchScalarGridSpec(
            num_scalar_prefetch=0,
            grid=(g,),
            in_specs=[*weight_specs,
                      pl.BlockSpec((tb, h_in, w_in), lambda i: (i, 0, 0))],
            out_specs=pl.BlockSpec((tb, h_out, w_out), lambda i: (i, 0, 0)),
        ),
        compiler_params=pltpu.CompilerParams(
            dimension_semantics=("parallel",),
            vmem_limit_bytes=vmem_limit,
        ),
    )(*weights, x_flat)

    if b_pad != b:
        out_flat = out_flat[:b]
    return out_flat.reshape(n, c, h_out, w_out)


# ---------------------------------------------------------------------------
# Reference + module mirror + self-test.
# ---------------------------------------------------------------------------
def _reference_bilinear(x, size):
    """Direct gather+lerp reference of PyTorch bilinear align_corners=False."""
    x = np.asarray(x, dtype=np.float32)
    n, c, h_in, w_in = x.shape
    h_out, w_out = size

    def coords(out_size, in_size):
        scale = in_size / out_size
        src = (np.arange(out_size, dtype=np.float64) + 0.5) * scale - 0.5
        src = np.clip(src, 0.0, in_size - 1)
        lo = np.floor(src).astype(np.int64)
        hi = np.minimum(lo + 1, in_size - 1)
        w = (src - lo).astype(np.float32)
        return lo, hi, w

    ylo, yhi, wy = coords(h_out, h_in)
    xlo, xhi, wx = coords(w_out, w_in)
    wy = wy.reshape(1, 1, h_out, 1)
    wx = wx.reshape(1, 1, 1, w_out)

    top = x[:, :, ylo, :]
    bot = x[:, :, yhi, :]
    row = top * (1.0 - wy) + bot * wy                  # (N, C, H_out, W_in)
    out = row[:, :, :, xlo] * (1.0 - wx) + row[:, :, :, xhi] * wx
    return out


class Interpolate:
    """Mirror of the PyTorch module (no parameters)."""

    def __init__(self, size, mode):
        assert mode == "bilinear", "only bilinear is implemented"
        # TODO(synk): other F.interpolate modes (nearest, bicubic, ...) not needed here.
        self.size = size
        self.mode = mode

    def __call__(self, x):
        return interpolate_bilinear(x, self.size)


if __name__ == "__main__":
    root = jax.random.PRNGKey(0)
    k0, k1 = jax.random.split(root)

    # Main case: (2, 4, 16, 16) -> (32, 32), f32, default (bf16_3x) precision.
    x = jax.random.normal(k0, (2, 4, 16, 16), dtype=jnp.float32)
    module = Interpolate(size=(32, 32), mode="bilinear")
    out = jax.block_until_ready(module(x))
    assert out.shape == (2, 4, 32, 32), out.shape
    ref = _reference_bilinear(x, (32, 32))
    np.testing.assert_allclose(np.asarray(out), ref, atol=1e-3, rtol=1e-3)

    # Exact (Precision.HIGHEST) opt-in path matches the f32 reference tightly.
    out_exact = jax.block_until_ready(interpolate_bilinear(x, (32, 32), exact=True))
    np.testing.assert_allclose(np.asarray(out_exact), ref, atol=1e-5, rtol=1e-5)

    # Odd sizes + plane-padding path (N*C = 3 -> padded to 4, grid of 2).
    x2 = jax.random.normal(k1, (1, 3, 8, 8), dtype=jnp.float32)
    out2 = jax.block_until_ready(interpolate_bilinear(x2, (15, 11)))
    np.testing.assert_allclose(np.asarray(out2), _reference_bilinear(x2, (15, 11)),
                               atol=1e-3, rtol=1e-3)

    print("KERNEL_OK")
</pallas_src>

<mosaic_0001>
module attributes {stable_mosaic.version = 11 : i64} {
  func.func @_interp_kernel_3x(%arg0: i32, %arg1: memref<32x16xbf16, #tpu.memory_space<vmem>>, %arg2: memref<32x16xbf16, #tpu.memory_space<vmem>>, %arg3: memref<16x32xbf16, #tpu.memory_space<vmem>>, %arg4: memref<16x32xbf16, #tpu.memory_space<vmem>>, %arg5: memref<4x16x16xf32, #tpu.memory_space<vmem>>, %arg6: memref<4x32x32xf32, #tpu.memory_space<vmem>>) attributes {dimension_semantics = [#tpu.dimension_semantics<parallel>], iteration_bounds = array<i64: 2>, scalar_prefetch = 0 : i64, scratch_operands = 0 : i64, tpu.core_type = #tpu.core_type<tc>, window_params = [{pipeline_mode = #tpu.pipeline_mode<synchronous>, transform_indices = @transform_0, window_bounds = array<i64: 32, 16>}, {pipeline_mode = #tpu.pipeline_mode<synchronous>, transform_indices = @transform_1, window_bounds = array<i64: 32, 16>}, {pipeline_mode = #tpu.pipeline_mode<synchronous>, transform_indices = @transform_2, window_bounds = array<i64: 16, 32>}, {pipeline_mode = #tpu.pipeline_mode<synchronous>, transform_indices = @transform_3, window_bounds = array<i64: 16, 32>}, {transform_indices = @transform_4, window_bounds = array<i64: 4, 16, 16>}, {transform_indices = @transform_5, window_bounds = array<i64: 4, 32, 32>}]} {
    %c0 = arith.constant 0 : index
    %c0_0 = arith.constant 0 : index
    %0 = vector.load %arg1[%c0, %c0_0] : memref<32x16xbf16, #tpu.memory_space<vmem>>, vector<32x16xbf16>
    %c0_1 = arith.constant 0 : index
    %c0_2 = arith.constant 0 : index
    %1 = vector.load %arg2[%c0_1, %c0_2] : memref<32x16xbf16, #tpu.memory_space<vmem>>, vector<32x16xbf16>
    %c0_3 = arith.constant 0 : index
    %c0_4 = arith.constant 0 : index
    %2 = vector.load %arg3[%c0_3, %c0_4] : memref<16x32xbf16, #tpu.memory_space<vmem>>, vector<16x32xbf16>
    %c0_5 = arith.constant 0 : index
    %c0_6 = arith.constant 0 : index
    %3 = vector.load %arg4[%c0_5, %c0_6] : memref<16x32xbf16, #tpu.memory_space<vmem>>, vector<16x32xbf16>
    %c0_i32 = arith.constant 0 : i32
    %4 = arith.index_cast %c0_i32 : i32 to index
    %c0_7 = arith.constant 0 : index
    %c0_8 = arith.constant 0 : index
    %5 = vector.load %arg5[%4, %c0_7, %c0_8] : memref<4x16x16xf32, #tpu.memory_space<vmem>>, vector<1x16x16xf32>
    %6 = vector.shape_cast %5 : vector<1x16x16xf32> to vector<16x16xf32>
    %7 = arith.truncf %6 : vector<16x16xf32> to vector<16x16xbf16>
    %8 = arith.extf %7 : vector<16x16xbf16> to vector<16x16xf32>
    %9 = arith.subf %6, %8 : vector<16x16xf32>
    %10 = arith.truncf %9 : vector<16x16xf32> to vector<16x16xbf16>
    %cst = arith.constant dense<0.000000e+00> : vector<32x16xf32>
    %11 = tpu.matmul %0, %7, %cst {dimension_numbers = #tpu.dot_dimension_numbers<[1], [0], [0], [1], [0, 0, 1, 1], [], []>} : vector<32x16xbf16>, vector<16x16xbf16>, vector<32x16xf32> -> vector<32x16xf32>
    %cst_9 = arith.constant dense<0.000000e+00> : vector<32x16xf32>
    %12 = tpu.matmul %0, %10, %cst_9 {dimension_numbers = #tpu.dot_dimension_numbers<[1], [0], [0], [1], [0, 0, 1, 1], [], []>} : vector<32x16xbf16>, vector<16x16xbf16>, vector<32x16xf32> -> vector<32x16xf32>
    %13 = arith.addf %11, %12 : vector<32x16xf32>
    %cst_10 = arith.constant dense<0.000000e+00> : vector<32x16xf32>
    %14 = tpu.matmul %1, %7, %cst_10 {dimension_numbers = #tpu.dot_dimension_numbers<[1], [0], [0], [1], [0, 0, 1, 1], [], []>} : vector<32x16xbf16>, vector<16x16xbf16>, vector<32x16xf32> -> vector<32x16xf32>
    %15 = arith.addf %13, %14 : vector<32x16xf32>
    %16 = arith.truncf %15 : vector<32x16xf32> to vector<32x16xbf16>
    %17 = arith.extf %16 : vector<32x16xbf16> to vector<32x16xf32>
    %18 = arith.subf %15, %17 : vector<32x16xf32>
    %19 = arith.truncf %18 : vector<32x16xf32> to vector<32x16xbf16>
    %cst_11 = arith.constant dense<0.000000e+00> : vector<32x32xf32>
    %20 = tpu.matmul %16, %2, %cst_11 {dimension_numbers = #tpu.dot_dimension_numbers<[1], [0], [0], [1], [0, 0, 1, 1], [], []>} : vector<32x16xbf16>, vector<16x32xbf16>, vector<32x32xf32> -> vector<32x32xf32>
    %cst_12 = arith.constant dense<0.000000e+00> : vector<32x32xf32>
    %21 = tpu.matmul %16, %3, %cst_12 {dimension_numbers = #tpu.dot_dimension_numbers<[1], [0], [0], [1], [0, 0, 1, 1], [], []>} : vector<32x16xbf16>, vector<16x32xbf16>, vector<32x32xf32> -> vector<32x32xf32>
    %22 = arith.addf %20, %21 : vector<32x32xf32>
    %cst_13 = arith.constant dense<0.000000e+00> : vector<32x32xf32>
    %23 = tpu.matmul %19, %2, %cst_13 {dimension_numbers = #tpu.dot_dimension_numbers<[1], [0], [0], [1], [0, 0, 1, 1], [], []>} : vector<32x16xbf16>, vector<16x32xbf16>, vector<32x32xf32> -> vector<32x32xf32>
    %24 = arith.addf %22, %23 : vector<32x32xf32>
    %25 = arith.index_cast %c0_i32 : i32 to index
    %c0_14 = arith.constant 0 : index
    %c0_15 = arith.constant 0 : index
    %26 = vector.load %arg6[%25, %c0_14, %c0_15] : memref<4x32x32xf32, #tpu.memory_space<vmem>>, vector<1x32x32xf32>
    %27 = vector.shape_cast %26 : vector<1x32x32xf32> to vector<32x32xf32>
    %28 = vector.shape_cast %24 : vector<32x32xf32> to vector<1x32x32xf32>
    tpu.vector_store %arg6[%25, %c0_14, %c0_15], %28 {strides = array<i32>} : memref<4x32x32xf32, #tpu.memory_space<vmem>>, vector<1x32x32xf32>,
    %c1_i32 = arith.constant 1 : i32
    %29 = arith.index_cast %c1_i32 : i32 to index
    %c0_16 = arith.constant 0 : index
    %c0_17 = arith.constant 0 : index
    %30 = vector.load %arg5[%29, %c0_16, %c0_17] : memref<4x16x16xf32, #tpu.memory_space<vmem>>, vector<1x16x16xf32>
    %31 = vector.shape_cast %30 : vector<1x16x16xf32> to vector<16x16xf32>
    %32 = arith.truncf %31 : vector<16x16xf32> to vector<16x16xbf16>
    %33 = arith.extf %32 : vector<16x16xbf16> to vector<16x16xf32>
    %34 = arith.subf %31, %33 : vector<16x16xf32>
    %35 = arith.truncf %34 : vector<16x16xf32> to vector<16x16xbf16>
    %cst_18 = arith.constant dense<0.000000e+00> : vector<32x16xf32>
    %36 = tpu.matmul %0, %32, %cst_18 {dimension_numbers = #tpu.dot_dimension_numbers<[1], [0], [0], [1], [0, 0, 1, 1], [], []>} : vector<32x16xbf16>, vector<16x16xbf16>, vector<32x16xf32> -> vector<32x16xf32>
    %cst_19 = arith.constant dense<0.000000e+00> : vector<32x16xf32>
    %37 = tpu.matmul %0, %35, %cst_19 {dimension_numbers = #tpu.dot_dimension_numbers<[1], [0], [0], [1], [0, 0, 1, 1], [], []>} : vector<32x16xbf16>, vector<16x16xbf16>, vector<32x16xf32> -> vector<32x16xf32>
    %38 = arith.addf %36, %37 : vector<32x16xf32>
    %cst_20 = arith.constant dense<0.000000e+00> : vector<32x16xf32>
    %39 = tpu.matmul %1, %32, %cst_20 {dimension_numbers = #tpu.dot_dimension_numbers<[1], [0], [0], [1], [0, 0, 1, 1], [], []>} : vector<32x16xbf16>, vector<16x16xbf16>, vector<32x16xf32> -> vector<32x16xf32>
    %40 = arith.addf %38, %39 : vector<32x16xf32>
    %41 = arith.truncf %40 : vector<32x16xf32> to vector<32x16xbf16>
    %42 = arith.extf %41 : vector<32x16xbf16> to vector<32x16xf32>
    %43 = arith.subf %40, %42 : vector<32x16xf32>
    %44 = arith.truncf %43 : vector<32x16xf32> to vector<32x16xbf16>
    %cst_21 = arith.constant dense<0.000000e+00> : vector<32x32xf32>
    %45 = tpu.matmul %41, %2, %cst_21 {dimension_numbers = #tpu.dot_dimension_numbers<[1], [0], [0], [1], [0, 0, 1, 1], [], []>} : vector<32x16xbf16>, vector<16x32xbf16>, vector<32x32xf32> -> vector<32x32xf32>
    %cst_22 = arith.constant dense<0.000000e+00> : vector<32x32xf32>
    %46 = tpu.matmul %41, %3, %cst_22 {dimension_numbers = #tpu.dot_dimension_numbers<[1], [0], [0], [1], [0, 0, 1, 1], [], []>} : vector<32x16xbf16>, vector<16x32xbf16>, vector<32x32xf32> -> vector<32x32xf32>
    %47 = arith.addf %45, %46 : vector<32x32xf32>
    %cst_23 = arith.constant dense<0.000000e+00> : vector<32x32xf32>
    %48 = tpu.matmul %44, %2, %cst_23 {dimension_numbers = #tpu.dot_dimension_numbers<[1], [0], [0], [1], [0, 0, 1, 1], [], []>} : vector<32x16xbf16>, vector<16x32xbf16>, vector<32x32xf32> -> vector<32x32xf32>
    %49 = arith.addf %47, %48 : vector<32x32xf32>
    %50 = arith.index_cast %c1_i32 : i32 to index
    %c0_24 = arith.constant 0 : index
    %c0_25 = arith.constant 0 : index
    %51 = vector.load %arg6[%50, %c0_24, %c0_25] : memref<4x32x32xf32, #tpu.memory_space<vmem>>, vector<1x32x32xf32>
    %52 = vector.shape_cast %51 : vector<1x32x32xf32> to vector<32x32xf32>
    %53 = vector.shape_cast %49 : vector<32x32xf32> to vector<1x32x32xf32>
    tpu.vector_store %arg6[%50, %c0_24, %c0_25], %53 {strides = array<i32>} : memref<4x32x32xf32, #tpu.memory_space<vmem>>, vector<1x32x32xf32>,
    %c2_i32 = arith.constant 2 : i32
    %54 = arith.index_cast %c2_i32 : i32 to index
    %c0_26 = arith.constant 0 : index
    %c0_27 = arith.constant 0 : index
    %55 = vector.load %arg5[%54, %c0_26, %c0_27] : memref<4x16x16xf32, #tpu.memory_space<vmem>>, vector<1x16x16xf32>
    %56 = vector.shape_cast %55 : vector<1x16x16xf32> to vector<16x16xf32>
    %57 = arith.truncf %56 : vector<16x16xf32> to vector<16x16xbf16>
    %58 = arith.extf %57 : vector<16x16xbf16> to vector<16x16xf32>
    %59 = arith.subf %56, %58 : vector<16x16xf32>
    %60 = arith.truncf %59 : vector<16x16xf32> to vector<16x16xbf16>
    %cst_28 = arith.constant dense<0.000000e+00> : vector<32x16xf32>
    %61 = tpu.matmul %0, %57, %cst_28 {dimension_numbers = #tpu.dot_dimension_numbers<[1], [0], [0], [1], [0, 0, 1, 1], [], []>} : vector<32x16xbf16>, vector<16x16xbf16>, vector<32x16xf32> -> vector<32x16xf32>
    %cst_29 = arith.constant dense<0.000000e+00> : vector<32x16xf32>
    %62 = tpu.matmul %0, %60, %cst_29 {dimension_numbers = #tpu.dot_dimension_numbers<[1], [0], [0], [1], [0, 0, 1, 1], [], []>} : vector<32x16xbf16>, vector<16x16xbf16>, vector<32x16xf32> -> vector<32x16xf32>
    %63 = arith.addf %61, %62 : vector<32x16xf32>
    %cst_30 = arith.constant dense<0.000000e+00> : vector<32x16xf32>
    %64 = tpu.matmul %1, %57, %cst_30 {dimension_numbers = #tpu.dot_dimension_numbers<[1], [0], [0], [1], [0, 0, 1, 1], [], []>} : vector<32x16xbf16>, vector<16x16xbf16>, vector<32x16xf32> -> vector<32x16xf32>
    %65 = arith.addf %63, %64 : vector<32x16xf32>
    %66 = arith.truncf %65 : vector<32x16xf32> to vector<32x16xbf16>
    %67 = arith.extf %66 : vector<32x16xbf16> to vector<32x16xf32>
    %68 = arith.subf %65, %67 : vector<32x16xf32>
    %69 = arith.truncf %68 : vector<32x16xf32> to vector<32x16xbf16>
    %cst_31 = arith.constant dense<0.000000e+00> : vector<32x32xf32>
    %70 = tpu.matmul %66, %2, %cst_31 {dimension_numbers = #tpu.dot_dimension_numbers<[1], [0], [0], [1], [0, 0, 1, 1], [], []>} : vector<32x16xbf16>, vector<16x32xbf16>, vector<32x32xf32> -> vector<32x32xf32>
    %cst_32 = arith.constant dense<0.000000e+00> : vector<32x32xf32>
    %71 = tpu.matmul %66, %3, %cst_32 {dimension_numbers = #tpu.dot_dimension_numbers<[1], [0], [0], [1], [0, 0, 1, 1], [], []>} : vector<32x16xbf16>, vector<16x32xbf16>, vector<32x32xf32> -> vector<32x32xf32>
    %72 = arith.addf %70, %71 : vector<32x32xf32>
    %cst_33 = arith.constant dense<0.000000e+00> : vector<32x32xf32>
    %73 = tpu.matmul %69, %2, %cst_33 {dimension_numbers = #tpu.dot_dimension_numbers<[1], [0], [0], [1], [0, 0, 1, 1], [], []>} : vector<32x16xbf16>, vector<16x32xbf16>, vector<32x32xf32> -> vector<32x32xf32>
    %74 = arith.addf %72, %73 : vector<32x32xf32>
    %75 = arith.index_cast %c2_i32 : i32 to index
    %c0_34 = arith.constant 0 : index
    %c0_35 = arith.constant 0 : index
    %76 = vector.load %arg6[%75, %c0_34, %c0_35] : memref<4x32x32xf32, #tpu.memory_space<vmem>>, vector<1x32x32xf32>
    %77 = vector.shape_cast %76 : vector<1x32x32xf32> to vector<32x32xf32>
    %78 = vector.shape_cast %74 : vector<32x32xf32> to vector<1x32x32xf32>
    tpu.vector_store %arg6[%75, %c0_34, %c0_35], %78 {strides = array<i32>} : memref<4x32x32xf32, #tpu.memory_space<vmem>>, vector<1x32x32xf32>,
    %c3_i32 = arith.constant 3 : i32
    %79 = arith.index_cast %c3_i32 : i32 to index
    %c0_36 = arith.constant 0 : index
    %c0_37 = arith.constant 0 : index
    %80 = vector.load %arg5[%79, %c0_36, %c0_37] : memref<4x16x16xf32, #tpu.memory_space<vmem>>, vector<1x16x16xf32>
    %81 = vector.shape_cast %80 : vector<1x16x16xf32> to vector<16x16xf32>
    %82 = arith.truncf %81 : vector<16x16xf32> to vector<16x16xbf16>
    %83 = arith.extf %82 : vector<16x16xbf16> to vector<16x16xf32>
    %84 = arith.subf %81, %83 : vector<16x16xf32>
    %85 = arith.truncf %84 : vector<16x16xf32> to vector<16x16xbf16>
    %cst_38 = arith.constant dense<0.000000e+00> : vector<32x16xf32>
    %86 = tpu.matmul %0, %82, %cst_38 {dimension_numbers = #tpu.dot_dimension_numbers<[1], [0], [0], [1], [0, 0, 1, 1], [], []>} : vector<32x16xbf16>, vector<16x16xbf16>, vector<32x16xf32> -> vector<32x16xf32>
    %cst_39 = arith.constant dense<0.000000e+00> : vector<32x16xf32>
    %87 = tpu.matmul %0, %85, %cst_39 {dimension_numbers = #tpu.dot_dimension_numbers<[1], [0], [0], [1], [0, 0, 1, 1], [], []>} : vector<32x16xbf16>, vector<16x16xbf16>, vector<32x16xf32> -> vector<32x16xf32>
    %88 = arith.addf %86, %87 : vector<32x16xf32>
    %cst_40 = arith.constant dense<0.000000e+00> : vector<32x16xf32>
    %89 = tpu.matmul %1, %82, %cst_40 {dimension_numbers = #tpu.dot_dimension_numbers<[1], [0], [0], [1], [0, 0, 1, 1], [], []>} : vector<32x16xbf16>, vector<16x16xbf16>, vector<32x16xf32> -> vector<32x16xf32>
    %90 = arith.addf %88, %89 : vector<32x16xf32>
    %91 = arith.truncf %90 : vector<32x16xf32> to vector<32x16xbf16>
    %92 = arith.extf %91 : vector<32x16xbf16> to vector<32x16xf32>
    %93 = arith.subf %90, %92 : vector<32x16xf32>
    %94 = arith.truncf %93 : vector<32x16xf32> to vector<32x16xbf16>
    %cst_41 = arith.constant dense<0.000000e+00> : vector<32x32xf32>
    %95 = tpu.matmul %91, %2, %cst_41 {dimension_numbers = #tpu.dot_dimension_numbers<[1], [0], [0], [1], [0, 0, 1, 1], [], []>} : vector<32x16xbf16>, vector<16x32xbf16>, vector<32x32xf32> -> vector<32x32xf32>
    %cst_42 = arith.constant dense<0.000000e+00> : vector<32x32xf32>
    %96 = tpu.matmul %91, %3, %cst_42 {dimension_numbers = #tpu.dot_dimension_numbers<[1], [0], [0], [1], [0, 0, 1, 1], [], []>} : vector<32x16xbf16>, vector<16x32xbf16>, vector<32x32xf32> -> vector<32x32xf32>
    %97 = arith.addf %95, %96 : vector<32x32xf32>
    %cst_43 = arith.constant dense<0.000000e+00> : vector<32x32xf32>
    %98 = tpu.matmul %94, %2, %cst_43 {dimension_numbers = #tpu.dot_dimension_numbers<[1], [0], [0], [1], [0, 0, 1, 1], [], []>} : vector<32x16xbf16>, vector<16x32xbf16>, vector<32x32xf32> -> vector<32x32xf32>
    %99 = arith.addf %97, %98 : vector<32x32xf32>
    %100 = arith.index_cast %c3_i32 : i32 to index
    %c0_44 = arith.constant 0 : index
    %c0_45 = arith.constant 0 : index
    %101 = vector.load %arg6[%100, %c0_44, %c0_45] : memref<4x32x32xf32, #tpu.memory_space<vmem>>, vector<1x32x32xf32>
    %102 = vector.shape_cast %101 : vector<1x32x32xf32> to vector<32x32xf32>
    %103 = vector.shape_cast %99 : vector<32x32xf32> to vector<1x32x32xf32>
    tpu.vector_store %arg6[%100, %c0_44, %c0_45], %103 {strides = array<i32>} : memref<4x32x32xf32, #tpu.memory_space<vmem>>, vector<1x32x32xf32>,
    %c4_i32 = arith.constant 4 : i32
    return
  }
  func.func @transform_0(%arg0: i32) -> (i32, i32) {
    %c0_i32 = arith.constant 0 : i32
    %c0_i32_0 = arith.constant 0 : i32
    %c0_i32_1 = arith.constant 0 : i32
    return %c0_i32, %c0_i32_0 : i32, i32
  }
  func.func @transform_1(%arg0: i32) -> (i32, i32) {
    %c0_i32 = arith.constant 0 : i32
    %c0_i32_0 = arith.constant 0 : i32
    %c0_i32_1 = arith.constant 0 : i32
    return %c0_i32, %c0_i32_0 : i32, i32
  }
  func.func @transform_2(%arg0: i32) -> (i32, i32) {
    %c0_i32 = arith.constant 0 : i32
    %c0_i32_0 = arith.constant 0 : i32
    %c0_i32_1 = arith.constant 0 : i32
    return %c0_i32, %c0_i32_0 : i32, i32
  }
  func.func @transform_3(%arg0: i32) -> (i32, i32) {
    %c0_i32 = arith.constant 0 : i32
    %c0_i32_0 = arith.constant 0 : i32
    %c0_i32_1 = arith.constant 0 : i32
    return %c0_i32, %c0_i32_0 : i32, i32
  }
  func.func @transform_4(%arg0: i32) -> (i32, i32, i32) {
    %c0_i32 = arith.constant 0 : i32
    %c0_i32_0 = arith.constant 0 : i32
    %c0_i32_1 = arith.constant 0 : i32
    return %arg0, %c0_i32, %c0_i32_0 : i32, i32, i32
  }
  func.func @transform_5(%arg0: i32) -> (i32, i32, i32) {
    %c0_i32 = arith.constant 0 : i32
    %c0_i32_0 = arith.constant 0 : i32
    %c0_i32_1 = arith.constant 0 : i32
    return %arg0, %c0_i32, %c0_i32_0 : i32, i32, i32
  }
}

</mosaic_0001>

<bundles_post_ra>
// kernel: tpu_custom_call.1
= control target key start
LH: loop header
LB: loop body
LE: loop exit
PB: predicated region body
PF: predicated region fallthrough
CT: control target
= control target key end

     0   :  { %10 = vsyncpa [#allocation3], 0  ;;  %s2635_s0 = inlined_call_operand.vmem [shape: bf16[32,16], index: 0, kind: input, shape index: {}]   ;;  %s2636_s1 = inlined_call_operand.vmem [shape: bf16[32,16], index: 1, kind: input, shape index: {}]   ;;  %s2637_s2 = inlined_call_operand.vmem [shape: bf16[16,32], index: 2, kind: input, shape index: {}]   ;;  %s2638_s3 = inlined_call_operand.vmem [shape: bf16[16,32], index: 3, kind: input, shape index: {}]   ;;  %s2639_s4 = inlined_call_operand.hbm [shape: f32[8,16,16], index: 4, kind: input, shape index: {}]   ;;  %s2640_s5 = inlined_call_operand.hbm [shape: f32[8,32,32], index: 5, kind: output, shape index: {}]  }
   0x1   :  { %12 = vsyncpa [#allocation3 + $0x1], 0 }
   0x2   :  { %13 = vsyncpa [#allocation4], 0 }
   0x3   :  { %15 = vsyncpa [#allocation4 + $0x1], 0  ;;  %s2313_s18 = smov 0   ;;  %s2315_s19 = smov 0  }
   0x4   :  { %s2317_s20 = smov 0   ;;  %s2319_s21 = smov 0  }
   0x5 LB: > { %s2334_s22 = sadd.s32 4294967295, %s2275_s21   ;;  %s1751_s23 = sadd.s32 4294967294, %s2275_s21   ;;  %s2275_s21 = sphi %s2319_s21, %s2653_s21   ;;  %s2271_s20 = sphi %s2317_s20, %s2652_s20   ;;  %s2267_s19 = sphi %s2315_s19, %s2651_s19   ;;  %s2263_s18 = sphi %s2313_s18, %s2650_s18  }
   0x6   : > { %s2338_s24 = sadd.s32 1, %s2275_s21   ;;  %s112_s25 = sadd.s32 1, %s2271_s20 }
   0x7   : > { %s109_s26 = ssub.s32 %s2275_s21, %s2338_s24  ;;  %p119_p0 = scmp.ne.s32.totalorder %s2271_s20, %s2267_s19 }
   0x8   : > { %p110_p1 = scmp.eq.s32.totalorder %s109_s26, 0  ;;  %p120_p2 = scmp.eq.s32.totalorder %s2275_s21, 0 }
   0x9   : > { %p125_p3 = scmp.ne.s32.totalorder %s2267_s19, %s2263_s18  ;;  %p126_p4 = scmp.eq.s32.totalorder %s2334_s22, 0 }
   0xa   : > { %s2350_s27 = scalar_select %p110_p1, %s2271_s20, %s112_s25  }
   0xb   : > { %p2352_p5 = por %p120_p2, %p119_p0  ;;  %p2356_p6 = por %p126_p4, %p125_p3 }
   0xc   : > { %p149_p7 = scmp.eq.s32.totalorder %s2334_s22, 1  ;;  %p155_p8 = scmp.eq.s32.totalorder %s1751_s23, 1 }
   0xd   : > { %p2135_p10 = scmp.lt.s32.totalorder %s2275_s21, 2  ;;  %s187_s7 = sand.u32 1, %s2271_s20  }
   0xe   : > { %p2363_p11 = por %p149_p7, %p119_p0  ;;  %p2367_p12 = por %p155_p8, %p125_p3 }
   0xf   : > { %s1840_s8 = sshll.u32 %s2275_s21, 10  ;;  %s1754_s9 = sshll.u32 %s187_s7, 6 }
  0x10   : > { %s2644_s30 = scalar_select %p2363_p11, 1, 0 }
  0x11   : > { %s2645_s6 = scalar_select %p2367_p12, 1, 0 }
  0x12   : > { %s2376_s12 = scalar_lea.hbm %s2639_s4, %s1840_s8  ;;  %s191_s13 = scalar_lea.vmem [#allocation2], %s1754_s9 }
  0x13   : > { %s199_s14 = sshll.u32 %s191_s13, 4  ;;  %p2380_p13 = pnand %p2135_p10, %p2352_p5  ;;  %s2384_s14 = int_to_ptr.vmem [resolvable:$true] %s199_s14 }
  0x14   : > { %s2386_s16 = scalar_lea.sflag [#allocation3], %s187_s7  ;;  %s2179_s17 = scalar_lea.hbm %s2376_s12, 1024 }
  0x15   : > { %p2180_p0 = scmp.ne.s32.totalorder %s2376_s12, %s2179_s17  ;;  %p2181_p1 = pneg %p2380_p13 }
  0x16   : > { %s2184_s26 = scalar_lea.hbm %s2639_s4, 2048  ;;  %p2185_p4 = scmp.lt.u32.totalorder %s2376_s12, %s2639_s4 }
  0x17   : > { %p2182_p2 = pnand %p2181_p1, %p2180_p0  ;;  %p2186_p5 = scmp.lt.u32.totalorder %s2184_s26, %s2179_s17 }
  0x18   : > { %p2188_p8 = scmp.lt.u32.totalorder %s2179_s17, %s2376_s12 }
  0x19   : > { %p2183_p3 = pneg %p2182_p2  ;;  %p2187_p7 = por %p2186_p5, %p2185_p4 }
  0x1b   : > { %p2189_p10 = por %p2188_p8, %p2187_p7 }
  0x1d   : > { %p2190_p9 = pnand %p2189_p10, %p2183_p3 }
  0x1f   : > { %2193 = shalt.err (!%p2190_p9)
}
  0x20   : > { %s2194_s7 = scalar_lea.vmem %s2384_s14, 1024  ;;  %s2277_s9 = smov [#allocation2]  }
  0x21   : > { %p2195_p0 = scmp.ne.s32.totalorder %s2384_s14, %s2194_s7  ;;  %s2199_s10 = sshll.u32 %s2277_s9, 4  ;;  %s2200_s10 = int_to_ptr.vmem [resolvable:$false] %s2199_s10 }
  0x22   : > { %s2201_s11 = scalar_lea.vmem %s2200_s10, 2048  ;;  %p2202_p11 = scmp.lt.s32.totalorder %s2384_s14, %s2200_s10 }
  0x23   : > { %p2197_p2 = pnand %p2195_p0, %p2181_p1  ;;  %p2203_p4 = scmp.lt.s32.totalorder %s2201_s11, %s2194_s7 }
  0x25   : > { %p2198_p12 = pneg %p2197_p2  ;;  %p2204_p5 = por %p2203_p4, %p2202_p11 }
  0x27   : > { %p2205_p7 = pnand %p2204_p5, %p2198_p12 }
  0x29   : > { %2208 = shalt.err (!%p2205_p7)
}
  0x2a   : > { %s2278_s13 = smov 128   ;;  %s2279_s17 = smov 8  }
  0x2b   : > { %2130 = dma.hbm_to_vmem [thread:$0]  (!%p2380_p13), %s2376_s12, 1024, %s2384_s14, %s2386_s16, %s2278_s13, %s2278_s13, %s2279_s17  }
  0x2c   : > { %p1758_p9 = scmp.ge.s32.totalorder %s2275_s21, 1  ;;  %p207_p1 = scmp.lt.s32.totalorder %s2275_s21, 3 }
  0x2e   : > { %p208_p3 = pnand %p1758_p9, %p207_p1 }
  0x2f   : > { %s2417_s23 = sand.u32 (!%p208_p3), 1, %s2267_s19  }
  0x30   : > { %211 = sbr.rel (%p208_p3) target bundleno = 661 (0x295), region = 40  ;;  %s1759_s25 = sshll.u32 (!%p208_p3), %s2417_s23, 6 }
  0x31   : > { %s214_s26 = scalar_lea.sflag (!%p208_p3), [#allocation3], %s2417_s23  ;;  %s2421_s28 = scalar_lea.vmem (!%p208_p3), [#allocation2], %s1759_s25 }
  0x37   : > { %2254 = dma.done.wait (%p2356_p6), %s214_s26, 1024  }
  0x38   : > { %2256 = vsyncadd (%p2356_p6), %s214_s26, 4294966272  ;;  %v259_v0 = vld [vmem:[%s2421_s28] sm:$0xff]  ;;  %v260_v1 = vld [vmem:[%s2421_s28 + $0x8] sm:$0xff]  ;;  %vm277_vm0 = vcmask 130048   ;;  %s1760_s25 = sshll.u32 %s2417_s23, 7  ;;  %vm638_vm1 = vcmask 261120  }
  0x39   : > { %v261_v2 = vpack.c.bf16 %v260_v1, %v259_v0  ;;  %v2432_v3 = vld [vmem:[%s2635_s0] sm:$0xff]   ;;  %v1780_v10 = vld [vmem:[%s2421_s28 + $0x18] sm:$0xff]  ;;  %v1797_v20 = vld [vmem:[%s2421_s28 + $0x20] sm:$0xff]  ;;  %s2550_s26 = scalar_lea.vmem [#allocation5], %s1760_s25  ;;  %p2647_p11 = scmp.ne.s32.totalorder %s2644_s30, 0 }
  0x3a   : > { %1917 = vmatprep.mubr.msk.bf16.mxu0 %vm277_vm0, %v2432_v3  ;;  %v1779_v9 = vld [vmem:[%s2421_s28 + $0x10] sm:$0xff]  ;;  %v2441_v11 = vld [vmem:[%s2635_s0 + $0x8] sm:$0xff]   ;;  %v1798_v21 = vld [vmem:[%s2421_s28 + $0x28] sm:$0xff]  ;;  %s1678_s12 = sshll.u32 %s2550_s26, 4  ;;  %s2280_s8 = smov [#allocation5]   ;;  %s2585_s12 = int_to_ptr.vmem [resolvable:$true] %s1678_s12 }
  0x3b   : > { %v262_v4 = vunpack.c.l.bf16 %v261_v2  ;;  %v263_v5 = vunpack.c.h.bf16 %v261_v2  ;;  %v646_v12 = vpack.c.bf16 %v1780_v10, %v1779_v9  ;;  %v2175_v17 = vld [vmem:[%s2636_s1] sm:$0xff]   ;;  %v2176_v19 = vld [vmem:[%s2636_s1 + $0x8] sm:$0xff]   ;;  %v986_v22 = vpack.c.bf16 %v1798_v21, %v1797_v20  ;;  %s2209_s16 = scalar_lea.vmem %s2585_s12, 2048  ;;  %s2213_s7 = sshll.u32 %s2280_s8, 4  ;;  %s2214_s7 = int_to_ptr.vmem [resolvable:$false] %s2213_s7 }
  0x3c   : > { %v1815_v28 = vld [vmem:[%s2421_s28 + $0x30] sm:$0xff]  ;;  %v1816_v29 = vld [vmem:[%s2421_s28 + $0x38] sm:$0xff]  ;;  %s1842_s28 = sshll.u32 %s2334_s22, 11  ;;  %s1664_s22 = scalar_lea.sflag [#allocation4], %s2417_s23 }
  0x3d   : > { %v264_v6 = vsub.f32 %v259_v0, %v262_v4  ;;  %v265_v7 = vsub.f32 %v260_v1, %v263_v5  ;;  %v647_v13 = vunpack.c.l.bf16 %v646_v12  ;;  %v648_v14 = vunpack.c.h.bf16 %v646_v12  ;;  %v2492_v36 = vld [vmem:[%s2638_s3] sm:$0xff]   ;;  %s2583_s15 = scalar_lea.hbm %s2640_s5, %s1842_s28  ;;  %p2210_p6 = scmp.ne.s32.totalorder %s2585_s12, %s2209_s16 }
  0x3e   : > { %v987_v23 = vunpack.c.l.bf16 %v986_v22  ;;  %v988_v24 = vunpack.c.h.bf16 %v986_v22  ;;  %v1326_v30 = vpack.c.bf16 %v1816_v29, %v1815_v28  ;;  %1933 = vmatprep.subr.bf16.mxu1 %v2492_v36  ;;  %v2500_v37 = vld [vmem:[%s2637_s2] sm:$0xff]   ;;  %s2215_s9 = scalar_lea.vmem %s2214_s7, 4096  ;;  %p2216_p8 = scmp.lt.s32.totalorder %s2585_s12, %s2214_s7 }
  0x3f   : > { %v266_v8 = vpack.c.bf16 %v265_v7, %v264_v6  ;;  %v649_v15 = vsub.f32 %v1779_v9, %v647_v13  ;;  %v650_v16 = vsub.f32 %v1780_v10, %v648_v14  ;;  %1934 = vmatpush3.bf16.msra.mxu1 %v2492_v36  ;;  %p2211_p12 = pnand %p2210_p6, %p2647_p11  ;;  %p2217_p10 = scmp.lt.s32.totalorder %s2215_s9, %s2209_s16 }
  0x40   : > { %v989_v25 = vsub.f32 %v1797_v20, %v987_v23  ;;  %v990_v26 = vsub.f32 %v1798_v21, %v988_v24  ;;  %v1327_v31 = vunpack.c.l.bf16 %v1326_v30  ;;  %v1328_v32 = vunpack.c.h.bf16 %v1326_v30  ;;  %1939 = vmatprep.subr.bf16.mxu1 %v2500_v37 }
  0x41   : > { %1915 = vmatprep.subr.bf16.mxu0 %v266_v8  ;;  %v651_v18 = vpack.c.bf16 %v650_v16, %v649_v15  ;;  %p2212_p13 = pneg %p2211_p12  ;;  %p2218_p0 = por %p2217_p10, %p2216_p8 }
  0x42   : > { %1916 = vmatpush3.bf16.msra.mxu0 %v266_v8  ;;  %v991_v27 = vpack.c.bf16 %v990_v26, %v989_v25  ;;  %v1329_v33 = vsub.f32 %v1815_v28, %v1327_v31  ;;  %v1330_v34 = vsub.f32 %v1816_v29, %v1328_v32 }
  0x43   : > { %1921 = vmatprep.subr.bf16.mxu0 %v261_v2  ;;  %p2219_p2 = pnand %p2218_p0, %p2212_p13 }
  0x44   : > { %v1331_v35 = vpack.c.bf16 %v1330_v34, %v1329_v33 }
  0x45   : > { %1918 = vmatmul.mubr.msk.bf16.vlgmr.msra.gmra.mrb[0].mxu0 %vm277_vm0, %v2441_v11 }
  0x46   : > { %1922 = vmatpush3.bf16.msra.mxu0 %v261_v2  ;;  %1923 = vmatprep.mubr.msk.bf16.mxu0 %vm277_vm0, %v2432_v3 }
  0x47   : > { %1927 = vmatprep.subr.bf16.mxu0 %v261_v2 }
  0x51   : > { %1924 = vmatmul.mubr.msk.bf16.vlgmr.msra.gmra.mrb[0].mxu0 %vm277_vm0, %v2441_v11 }
  0x52   : > { %1928 = vmatpush3.bf16.msra.mxu0 %v261_v2  ;;  %1929 = vmatprep.mubr.msk.bf16.mxu0 %vm277_vm0, %v2175_v17 }
  0x53   : > { %1951 = vmatprep.subr.bf16.mxu0 %v651_v18 }
  0x5d   : > { %1930 = vmatmul.mubr.msk.bf16.vlgmr.msra.gmra.mrb[0].mxu0 %vm277_vm0, %v2176_v19 }
  0x5e   : > { %1952 = vmatpush3.bf16.msra.mxu0 %v651_v18  ;;  %1953 = vmatprep.mubr.msk.bf16.mxu0 %vm277_vm0, %v2432_v3 }
  0x5f   : > { %1957 = vmatprep.subr.bf16.mxu0 %v646_v12 }
  0x65   : > { %1954 = vmatmul.mubr.msk.bf16.vlgmr.msra.gmra.mrb[4].mxu0 %vm277_vm0, %v2441_v11 }
  0x66   : > { %1958 = vmatpush3.bf16.msra.mxu0 %v646_v12  ;;  %1959 = vmatprep.mubr.msk.bf16.mxu0 %vm277_vm0, %v2432_v3 }
  0x67   : > { %1963 = vmatprep.subr.bf16.mxu0 %v646_v12 }
  0x71   : > { %1960 = vmatmul.mubr.msk.bf16.vlgmr.msra.gmra.mrb[4].mxu0 %vm277_vm0, %v2441_v11 }
  0x72   : > { %1964 = vmatpush3.bf16.msra.mxu0 %v646_v12  ;;  %1965 = vmatprep.mubr.msk.bf16.mxu0 %vm277_vm0, %v2175_v17 }
  0x73   : > { %1987 = vmatprep.subr.bf16.mxu0 %v991_v27 }
  0x7d   : > { %1966 = vmatmul.mubr.msk.bf16.vlgmr.msra.gmra.mrb[4].mxu0 %vm277_vm0, %v2176_v19 }
  0x7e   : > { %1988 = vmatpush3.bf16.msra.mxu0 %v991_v27  ;;  %1989 = vmatprep.mubr.msk.bf16.mxu0 %vm277_vm0, %v2432_v3 }
  0x7f   : > { %1993 = vmatprep.subr.bf16.mxu0 %v986_v22 }
  0x85   : > { %1990 = vmatmul.mubr.msk.bf16.vlgmr.msra.gmra.mrb[8].mxu0 %vm277_vm0, %v2441_v11 }
  0x86   : > { %1994 = vmatpush3.bf16.msra.mxu0 %v986_v22  ;;  %1995 = vmatprep.mubr.msk.bf16.mxu0 %vm277_vm0, %v2432_v3 }
  0x87   : > { %1999 = vmatprep.subr.bf16.mxu0 %v986_v22 }
  0x91   : > { %1996 = vmatmul.mubr.msk.bf16.vlgmr.msra.gmra.mrb[8].mxu0 %vm277_vm0, %v2441_v11 }
  0x92   : > { %2000 = vmatpush3.bf16.msra.mxu0 %v986_v22  ;;  %2001 = vmatprep.mubr.msk.bf16.mxu0 %vm277_vm0, %v2175_v17 }
  0x93   : > { %2023 = vmatprep.subr.bf16.mxu0 %v1331_v35 }
  0x9d   : > { %2002 = vmatmul.mubr.msk.bf16.vlgmr.msra.gmra.mrb[8].mxu0 %vm277_vm0, %v2176_v19 }
  0x9e   : > { %2024 = vmatpush3.bf16.msra.mxu0 %v1331_v35  ;;  %2025 = vmatprep.mubr.msk.bf16.mxu0 %vm277_vm0, %v2432_v3 }
  0x9f   : > { %2029 = vmatprep.subr.bf16.mxu0 %v1326_v30 }
  0xa5   : > { %2026 = vmatmul.mubr.msk.bf16.vlgmr.msra.gmra.mrb[12].mxu0 %vm277_vm0, %v2441_v11 }
  0xa6   : > { %2030 = vmatpush3.bf16.msra.mxu0 %v1326_v30  ;;  %2031 = vmatprep.mubr.msk.bf16.mxu0 %vm277_vm0, %v2432_v3 }
  0xa7   : > { %2035 = vmatprep.subr.bf16.mxu0 %v1326_v30 }
  0xb1   : > { %2032 = vmatmul.mubr.msk.bf16.vlgmr.msra.gmra.mrb[12].mxu0 %vm277_vm0, %v2441_v11 }
  0xb2   : > { %2036 = vmatpush3.bf16.msra.mxu0 %v1326_v30  ;;  %2037 = vmatprep.mubr.msk.bf16.mxu0 %vm277_vm0, %v2175_v17 }
  0xbd   : > { %2038 = vmatmul.mubr.msk.bf16.vlgmr.msra.gmra.mrb[12].mxu0 %vm277_vm0, %v2176_v19 }
 0x130   : > { %v1931_v38 = vpop.f32.mrb[0].mxu0 }
 0x131   : > { %v432_v39 = vpop.f32.mrb[1].mxu0 }
 0x132   : > { %v1932_v40 = vpop.f32.mrb[2].mxu0 }
 0x133   : > { %v452_v41 = vpack.c.bf16 %v1932_v40, %v1931_v38  ;;  %v435_v42 = vpop.f32.mrb[3].mxu0 }
 0x134   : > { %v451_v43 = vpack.c.bf16 %v435_v42, %v432_v39 }
 0x135   : > { %v455_v44 = vunpack.c.l.bf16 %v452_v41  ;;  %v456_v45 = vunpack.c.h.bf16 %v452_v41 }
 0x136   : > { %v453_v46 = vunpack.c.l.bf16 %v451_v43  ;;  %v454_v47 = vunpack.c.h.bf16 %v451_v43  ;;  %1935 = vmatprep.mubr.msk.bf16.mxu1 %vm277_vm0, %v451_v43 }
 0x137   : > { %v459_v48 = vsub.f32 %v1931_v38, %v455_v44  ;;  %v460_v49 = vsub.f32 %v1932_v40, %v456_v45  ;;  %1936 = vmatmul.mubr.msk.bf16.vlgmr.msra.gmra.mrb[0].mxu1 %vm277_vm0, %v452_v41 }
 0x138   : > { %v457_v50 = vsub.f32 %v432_v39, %v453_v46  ;;  %v458_v51 = vsub.f32 %v435_v42, %v454_v47  ;;  %1940 = vmatpush3.bf16.msra.mxu1 %v2500_v37  ;;  %1941 = vmatprep.mubr.msk.bf16.mxu1 %vm277_vm0, %v451_v43 }
 0x139   : > { %v462_v52 = vpack.c.bf16 %v460_v49, %v459_v48  ;;  %1945 = vmatprep.subr.bf16.mxu1 %v2500_v37 }
 0x13a   : > { %v461_v53 = vpack.c.bf16 %v458_v51, %v457_v50 }
 0x143   : > { %1942 = vmatmul.mubr.msk.bf16.vlgmr.msra.gmra.mrb[0].mxu1 %vm277_vm0, %v452_v41 }
 0x144   : > { %1946 = vmatpush3.bf16.msra.mxu1 %v2500_v37  ;;  %1947 = vmatprep.mubr.msk.bf16.mxu1 %vm277_vm0, %v461_v53 }
 0x145   : > { %1969 = vmatprep.subr.bf16.mxu1 %v2492_v36 }
 0x14f   : > { %1948 = vmatmul.mubr.msk.bf16.vlgmr.msra.gmra.mrb[0].mxu1 %vm277_vm0, %v462_v52 }
 0x150   : > { %v1967_v54 = vpop.f32.mrb[4].mxu0  ;;  %1970 = vmatpush3.bf16.msra.mxu1 %v2492_v36 }
 0x151   : > { %v784_v55 = vpop.f32.mrb[5].mxu0  ;;  %1975 = vmatprep.subr.bf16.mxu1 %v2500_v37 }
 0x152   : > { %v1968_v56 = vpop.f32.mrb[6].mxu0 }
 0x153   : > { %v804_v57 = vpack.c.bf16 %v1968_v56, %v1967_v54  ;;  %v787_v58 = vpop.f32.mrb[7].mxu0 }
 0x154   : > { %v803_v59 = vpack.c.bf16 %v787_v58, %v784_v55 }
 0x155   : > { %v807_v60 = vunpack.c.l.bf16 %v804_v57  ;;  %v808_v61 = vunpack.c.h.bf16 %v804_v57 }
 0x156   : > { %v805_v62 = vunpack.c.l.bf16 %v803_v59  ;;  %v806_v63 = vunpack.c.h.bf16 %v803_v59  ;;  %1971 = vmatprep.mubr.msk.bf16.mxu1 %vm277_vm0, %v803_v59 }
 0x157   : > { %v811_v0 = vsub.f32 %v1967_v54, %v807_v60  ;;  %v812_v1 = vsub.f32 %v1968_v56, %v808_v61  ;;  %1972 = vmatmul.mubr.msk.bf16.vlgmr.msra.gmra.mrb[4].mxu1 %vm277_vm0, %v804_v57 }
 0x158   : > { %v809_v2 = vsub.f32 %v784_v55, %v805_v62  ;;  %v810_v3 = vsub.f32 %v787_v58, %v806_v63  ;;  %1976 = vmatpush3.bf16.msra.mxu1 %v2500_v37  ;;  %1977 = vmatprep.mubr.msk.bf16.mxu1 %vm277_vm0, %v803_v59 }
 0x159   : > { %v814_v4 = vpack.c.bf16 %v812_v1, %v811_v0  ;;  %1981 = vmatprep.subr.bf16.mxu1 %v2500_v37 }
 0x15a   : > { %v813_v5 = vpack.c.bf16 %v810_v3, %v809_v2 }
 0x163   : > { %1978 = vmatmul.mubr.msk.bf16.vlgmr.msra.gmra.mrb[4].mxu1 %vm277_vm0, %v804_v57 }
 0x164   : > { %1982 = vmatpush3.bf16.msra.mxu1 %v2500_v37  ;;  %1983 = vmatprep.mubr.msk.bf16.mxu1 %vm277_vm0, %v813_v5 }
 0x165   : > { %2005 = vmatprep.subr.bf16.mxu1 %v2492_v36 }
 0x16f   : > { %1984 = vmatmul.mubr.msk.bf16.vlgmr.msra.gmra.mrb[4].mxu1 %vm277_vm0, %v814_v4 }
 0x170   : > { %v2003_v6 = vpop.f32.mrb[8].mxu0  ;;  %2006 = vmatpush3.bf16.msra.mxu1 %v2492_v36 }
 0x171   : > { %v1124_v7 = vpop.f32.mrb[9].mxu0  ;;  %2011 = vmatprep.subr.bf16.mxu1 %v2500_v37 }
 0x172   : > { %v2004_v8 = vpop.f32.mrb[10].mxu0 }
 0x173   : > { %v1144_v9 = vpack.c.bf16 %v2004_v8, %v2003_v6  ;;  %v1127_v10 = vpop.f32.mrb[11].mxu0 }
 0x174   : > { %v1143_v11 = vpack.c.bf16 %v1127_v10, %v1124_v7 }
 0x175   : > { %v1147_v12 = vunpack.c.l.bf16 %v1144_v9  ;;  %v1148_v13 = vunpack.c.h.bf16 %v1144_v9 }
 0x176   : > { %v1145_v14 = vunpack.c.l.bf16 %v1143_v11  ;;  %v1146_v15 = vunpack.c.h.bf16 %v1143_v11  ;;  %2007 = vmatprep.mubr.msk.bf16.mxu1 %vm277_vm0, %v1143_v11 }
 0x177   : > { %v1151_v16 = vsub.f32 %v2003_v6, %v1147_v12  ;;  %v1152_v17 = vsub.f32 %v2004_v8, %v1148_v13  ;;  %2008 = vmatmul.mubr.msk.bf16.vlgmr.msra.gmra.mrb[8].mxu1 %vm277_vm0, %v1144_v9 }
 0x178   : > { %v1149_v18 = vsub.f32 %v1124_v7, %v1145_v14  ;;  %v1150_v19 = vsub.f32 %v1127_v10, %v1146_v15  ;;  %2012 = vmatpush3.bf16.msra.mxu1 %v2500_v37  ;;  %2013 = vmatprep.mubr.msk.bf16.mxu1 %vm277_vm0, %v1143_v11 }
 0x179   : > { %v1154_v20 = vpack.c.bf16 %v1152_v17, %v1151_v16  ;;  %2017 = vmatprep.subr.bf16.mxu1 %v2500_v37 }
 0x17a   : > { %v1153_v21 = vpack.c.bf16 %v1150_v19, %v1149_v18 }
 0x183   : > { %2014 = vmatmul.mubr.msk.bf16.vlgmr.msra.gmra.mrb[8].mxu1 %vm277_vm0, %v1144_v9 }
 0x184   : > { %2018 = vmatpush3.bf16.msra.mxu1 %v2500_v37  ;;  %2019 = vmatprep.mubr.msk.bf16.mxu1 %vm277_vm0, %v1153_v21 }
 0x185   : > { %2041 = vmatprep.subr.bf16.mxu1 %v2492_v36 }
 0x18f   : > { %2020 = vmatmul.mubr.msk.bf16.vlgmr.msra.gmra.mrb[8].mxu1 %vm277_vm0, %v1154_v20 }
 0x190   : > { %v2039_v22 = vpop.f32.mrb[12].mxu0  ;;  %2042 = vmatpush3.bf16.msra.mxu1 %v2492_v36 }
 0x191   : > { %v1464_v23 = vpop.f32.mrb[13].mxu0  ;;  %2047 = vmatprep.subr.bf16.mxu1 %v2500_v37 }
 0x192   : > { %v2040_v24 = vpop.f32.mrb[14].mxu0 }
 0x193   : > { %v1484_v25 = vpack.c.bf16 %v2040_v24, %v2039_v22  ;;  %v1467_v26 = vpop.f32.mrb[15].mxu0 }
 0x194   : > { %v1483_v27 = vpack.c.bf16 %v1467_v26, %v1464_v23 }
 0x195   : > { %v1487_v28 = vunpack.c.l.bf16 %v1484_v25  ;;  %v1488_v29 = vunpack.c.h.bf16 %v1484_v25 }
 0x196   : > { %v1485_v30 = vunpack.c.l.bf16 %v1483_v27  ;;  %v1486_v31 = vunpack.c.h.bf16 %v1483_v27  ;;  %2043 = vmatprep.mubr.msk.bf16.mxu1 %vm277_vm0, %v1483_v27 }
 0x197   : > { %v1491_v32 = vsub.f32 %v2039_v22, %v1487_v28  ;;  %v1492_v33 = vsub.f32 %v2040_v24, %v1488_v29  ;;  %2044 = vmatmul.mubr.msk.bf16.vlgmr.msra.gmra.mrb[12].mxu1 %vm277_vm0, %v1484_v25 }
 0x198   : > { %v1489_v34 = vsub.f32 %v1464_v23, %v1485_v30  ;;  %v1490_v35 = vsub.f32 %v1467_v26, %v1486_v31  ;;  %2048 = vmatpush3.bf16.msra.mxu1 %v2500_v37  ;;  %2049 = vmatprep.mubr.msk.bf16.mxu1 %vm277_vm0, %v1483_v27 }
 0x199   : > { %v1494_v36 = vpack.c.bf16 %v1492_v33, %v1491_v32  ;;  %2053 = vmatprep.subr.bf16.mxu1 %v2500_v37 }
 0x19a   : > { %v1493_v38 = vpack.c.bf16 %v1490_v35, %v1489_v34 }
 0x1a3   : > { %2050 = vmatmul.mubr.msk.bf16.vlgmr.msra.gmra.mrb[12].mxu1 %vm277_vm0, %v1484_v25 }
 0x1a4   : > { %2054 = vmatpush3.bf16.msra.mxu1 %v2500_v37  ;;  %2055 = vmatprep.mubr.msk.bf16.mxu1 %vm277_vm0, %v1493_v38 }
 0x1af   : > { %2056 = vmatmul.mubr.msk.bf16.vlgmr.msra.gmra.mrb[12].mxu1 %vm277_vm0, %v1494_v36 }
 0x222   : > { %v1949_v39 = vpop.f32.mrb[0].mxu1 }
 0x223   : > { %641 = vst.msk [vmem:[%s2550_s26 + $0x10] sm:$0xff] %vm638_vm1, %v1949_v39  ;;  %v619_v37 = vpop.f32.mrb[1].mxu1 }
 0x224   : > { %639 = vst.msk [vmem:[%s2550_s26] sm:$0xff] %vm638_vm1, %v619_v37  ;;  %v1950_v40 = vpop.f32.mrb[2].mxu1 }
 0x225   : > { %642 = vst.msk [vmem:[%s2550_s26 + $0x18] sm:$0xff] %vm638_vm1, %v1950_v40  ;;  %v622_v41 = vpop.f32.mrb[3].mxu1 }
 0x226   : > { %640 = vst.msk [vmem:[%s2550_s26 + $0x8] sm:$0xff] %vm638_vm1, %v622_v41 }
 0x242   : > { %v1985_v42 = vpop.f32.mrb[4].mxu1 }
 0x243   : > { %1795 = vst.msk [vmem:[%s2550_s26 + $0x30] sm:$0xff] %vm638_vm1, %v1985_v42  ;;  %v959_v43 = vpop.f32.mrb[5].mxu1 }
 0x244   : > { %1793 = vst.msk [vmem:[%s2550_s26 + $0x20] sm:$0xff] %vm638_vm1, %v959_v43  ;;  %v1986_v44 = vpop.f32.mrb[6].mxu1 }
 0x245   : > { %1796 = vst.msk [vmem:[%s2550_s26 + $0x38] sm:$0xff] %vm638_vm1, %v1986_v44  ;;  %v962_v45 = vpop.f32.mrb[7].mxu1 }
 0x246   : > { %1794 = vst.msk [vmem:[%s2550_s26 + $0x28] sm:$0xff] %vm638_vm1, %v962_v45 }
 0x262   : > { %v2021_v46 = vpop.f32.mrb[8].mxu1 }
 0x263   : > { %1813 = vst.msk [vmem:[%s2550_s26 + $0x50] sm:$0xff] %vm638_vm1, %v2021_v46  ;;  %v1299_v47 = vpop.f32.mrb[9].mxu1 }
 0x264   : > { %1811 = vst.msk [vmem:[%s2550_s26 + $0x40] sm:$0xff] %vm638_vm1, %v1299_v47  ;;  %v2022_v48 = vpop.f32.mrb[10].mxu1 }
 0x265   : > { %1814 = vst.msk [vmem:[%s2550_s26 + $0x58] sm:$0xff] %vm638_vm1, %v2022_v48  ;;  %v1302_v49 = vpop.f32.mrb[11].mxu1 }
 0x266   : > { %1812 = vst.msk [vmem:[%s2550_s26 + $0x48] sm:$0xff] %vm638_vm1, %v1302_v49 }
 0x282   : > { %v2057_v50 = vpop.f32.mrb[12].mxu1 }
 0x283   : > { %1831 = vst.msk [vmem:[%s2550_s26 + $0x70] sm:$0xff] %vm638_vm1, %v2057_v50  ;;  %v1639_v51 = vpop.f32.mrb[13].mxu1 }
 0x284   : > { %1829 = vst.msk [vmem:[%s2550_s26 + $0x60] sm:$0xff] %vm638_vm1, %v1639_v51  ;;  %v2058_v52 = vpop.f32.mrb[14].mxu1 }
 0x285   : > { %1832 = vst.msk [vmem:[%s2550_s26 + $0x78] sm:$0xff] %vm638_vm1, %v2058_v52  ;;  %v1642_v53 = vpop.f32.mrb[15].mxu1 }
 0x286   : > { %1830 = vst.msk [vmem:[%s2550_s26 + $0x68] sm:$0xff] %vm638_vm1, %v1642_v53 }
 0x287   : > { %2222 = shalt.err (!%p2219_p2)
}
 0x288   : > { %s2223_s10 = scalar_lea.hbm %s2583_s15, 2048  ;;  %s2227_s17 = scalar_lea.hbm %s2640_s5, 4096 }
 0x289   : > { %p2224_p4 = scmp.ne.s32.totalorder %s2583_s15, %s2223_s10  ;;  %p2228_p9 = scmp.lt.u32.totalorder %s2583_s15, %s2640_s5 }
 0x28a   : > { %p2229_p1 = scmp.lt.u32.totalorder %s2227_s17, %s2223_s10  ;;  %p2231_p6 = scmp.lt.u32.totalorder %s2223_s10, %s2583_s15 }
 0x28b   : > { %p2225_p5 = pnand %p2224_p4, %p2647_p11 }
 0x28c   : > { %p2230_p3 = por %p2229_p1, %p2228_p9 }
 0x28d   : > { %p2226_p7 = pneg %p2225_p5 }
 0x28e   : > { %p2232_p12 = por %p2231_p6, %p2230_p3 }
 0x290   : > { %p2233_p13 = pnand %p2232_p12, %p2226_p7 }
 0x292   : > { %2236 = shalt.err (!%p2233_p13)
}
 0x293   : > { %s2281_s28 = smov 128   ;;  %s2282_s14 = smov 8  }
 0x294   : > { %2125 = dma.vmem_to_hbm [thread:$0]  (%p2647_p11), %s2585_s12, 2048, %s2583_s15, %s1664_s22, %s2281_s28, %s2281_s28, %s2282_s14  }
 0x295 PF: > { %s1693_s29 = sand.u32 1, %s2263_s18   ;;  %p2648_p8 = scmp.ne.s32.totalorder %s2645_s6, 0 }
 0x296   : > { %p2649_p10 = scmp.ge.s32.totalorder %s2275_s21, 2  ;;  %s1694_s16 = scalar_lea.sflag [#allocation4], %s1693_s29 }
 0x298   : > { %p2132_p0 = pnand %p2649_p10, %p2648_p8 }
 0x29a   : > { %2258 = dma.done.wait (!%p2132_p0), %s1694_s16, 2048  }
 0x29b   : > { %2260 = vsyncadd (!%p2132_p0), %s1694_s16, 4294965248  ;;  %p18_p2 = scmp.ge.s32.totalorder %s2338_s24, 4   ;;  %s2650_s18 = smov %s2267_s19 }
 0x29c   : > { %s2651_s19 = smov %s2271_s20  ;;  %s2652_s20 = smov %s2350_s27 }
 0x29d   : > { %s2653_s21 = smov %s2338_s24  ;;  %20 = sbr.rel (!%p18_p2) target bundleno = 5 (0x5), region = 91 }
 0x2a4   :  { %1699 = vsyncpa [#allocation3], 1 }
 0x2a5   :  { %1701 = vsyncpa [#allocation3 + $0x1], 1 }
 0x2a6   :  { %1702 = vsyncpa [#allocation4], 1 }
 0x2a7   :  { %1704 = vsyncpa [#allocation4 + $0x1], 1 }

</bundles_post_ra>
